<compile_context>
chip_gen: v7x
topology: tpu7x:2x2x1
jax: 0.10.0
libtpu: 0.0.40
codegen_flags: <defaults>
</compile_context>

<pallas_src>
import functools

import jax
import jax.numpy as jnp
from jax.experimental import pallas as pl
from jax.experimental.pallas import tpu as pltpu

LANE = 128    # feature dims padded to multiples of the 128-wide lane axis
SUB = 16      # node counts padded to multiples of 16 (bf16 packs 16 rows/vreg)
KALIGN = 256  # contraction tile alignment: fills 256x256 MXU (v6e/v7x), also /128 (v5e)


def _round_up(n, m):
    return (n + m - 1) // m * m


def _pad2d(a, rows, cols):
    r, c = a.shape
    return jnp.pad(a, ((0, rows - r), (0, cols - c)))


def _vmem_capacity_bytes():
    """Physical VMEM of the current TPU generation (conservative fallback)."""
    try:
        cap = int(getattr(pltpu.get_tpu_info(), "vmem_capacity_bytes", 0))
    except Exception:
        cap = 0
    return cap if cap > 0 else (64 << 20)   # v7x-sized fallback


def _fused_sage_kernel(a1_ref, x_ref, xdst_ref, a2_ref, a3_ref,
                       w1_ref, b1_ref, w2_ref, b2_ref, w3_ref, b3_ref,
                       o_ref, agg1_ref, *, n1, n2):
    """grid = (num_k,): co-stream A1 and X tiles over the src axis, reduce the
    layer-1 mean aggregation into a VMEM f32 accumulator; the epilogue (last
    grid step) runs the layer-1 projection and full layers 2 & 3 on
    VMEM-resident data (intermediates never touch HBM)."""
    k = pl.program_id(0)

    @pl.when(k == 0)
    def _init():
        agg1_ref[...] = jnp.zeros_like(agg1_ref)

    # ---- layer-1 mean aggregation: streamed A1 tile @ co-streamed X tile ----
    # In-kernel bf16 cast: the wrapper never does a cast pass over A1/X.
    a_tile = a1_ref[...].astype(jnp.bfloat16)          # (n1p, tk)
    x_tile = x_ref[...].astype(jnp.bfloat16)           # (tk, din_p)
    agg1_ref[...] += jnp.dot(a_tile, x_tile, preferred_element_type=jnp.float32)

    @pl.when(k == pl.num_programs(0) - 1)
    def _epilogue():
        din_p = w1_ref.shape[0] // 2
        dh_p = w2_ref.shape[0] // 2
        n2p = a2_ref.shape[0]
        n3p = a3_ref.shape[0]

        def project(agg_f32, h_dst_bf16, w_ref, b_ref, d_in, relu):
            # Linear(concat([agg, h_dst])) with packed weight W_cat=[W_neigh;W_self]:
            # two MXU dots with 128-padded K, f32 accumulation, f32 bias/ReLU.
            out = jnp.dot(agg_f32.astype(jnp.bfloat16), w_ref[:d_in, :],
                          preferred_element_type=jnp.float32)
            out += jnp.dot(h_dst_bf16, w_ref[d_in:, :],
                           preferred_element_type=jnp.float32)
            out += b_ref[...]
            if relu:
                out = jnp.maximum(out, 0.0)
            return out

        def zero_pad_rows(h, n_valid):
            # Padded dst rows would otherwise hold relu(b)/b garbage.
            if h.shape[0] == n_valid:
                return h
            rows = jax.lax.broadcasted_iota(jnp.int32, h.shape, 0)
            return jnp.where(rows < n_valid, h, 0.0)

        # layer 1: dst features = resident prefix of X (DGL block convention).
        h1 = project(agg1_ref[...], xdst_ref[...].astype(jnp.bfloat16),
                     w1_ref, b1_ref, din_p, relu=True)
        h1 = zero_pad_rows(h1, n1).astype(jnp.bfloat16)

        # layer 2: everything VMEM-resident, no HBM round trip.
        agg2 = jnp.dot(a2_ref[...], h1, preferred_element_type=jnp.float32)
        h2 = project(agg2, h1[:n2p, :], w2_ref, b2_ref, dh_p, relu=True)
        h2 = zero_pad_rows(h2, n2).astype(jnp.bfloat16)

        # layer 3 (no ReLU on the output layer), lane-dense f32 store.
        agg3 = jnp.dot(a3_ref[...], h2, preferred_element_type=jnp.float32)
        o_ref[...] = project(agg3, h2[:n3p, :], w3_ref, b3_ref, dh_p,
                             relu=False).astype(o_ref.dtype)


def sage_forward(blocks, x, params):
    """SAGE.forward: 3 CuGraphSAGEConv('mean') layers (ReLU between) fused into
    one Pallas kernel. `blocks` are dense row-normalized adjacencies."""
    a1, a2, a3 = blocks
    n1, n0 = a1.shape
    n2, n3 = a2.shape[0], a3.shape[0]
    in_size = params[0]["w_neigh"].shape[0]
    hid_size = params[0]["w_neigh"].shape[1]
    out_size = params[2]["w_neigh"].shape[1]

    din_p, dh_p, dout_p = (_round_up(d, LANE)
                           for d in (in_size, hid_size, out_size))
    n1p, n2p, n3p = (_round_up(n, SUB) for n in (n1, n2, n3))

    # ---- generation-aware VMEM budget -> contraction tile width tk ----------
    a1_bytes = jnp.dtype(a1.dtype).itemsize
    x_bytes = jnp.dtype(x.dtype).itemsize
    # Resident set (pessimistic: default double buffering on constant-index blocks).
    resident = n1p * din_p * 4                                # f32 agg1 scratch
    resident += 2 * (n1p * din_p * 2                          # X dst prefix
                     + n2p * n1p * 2 + n3p * n2p * 2          # A2, A3
                     + 2 * din_p * dh_p * 2 + dh_p * 4        # W1, b1
                     + 2 * dh_p * dh_p * 2 + dh_p * 4         # W2, b2
                     + 2 * dh_p * dout_p * 2 + dout_p * 4     # W3, b3
                     + n3p * dout_p * 4)                      # output block
    per_tk = 2 * (n1p * a1_bytes + din_p * x_bytes)           # 2x-buffered streams
    cap = _vmem_capacity_bytes()
    budget = cap * 3 // 4                                     # compiler headroom
    tk_cap = max(budget - resident, 0) // per_tk
    tk = max(KALIGN,
             min(int(tk_cap), _round_up(n0, KALIGN)) // KALIGN * KALIGN)
    n0p = _round_up(n0, tk)
    num_k = n0p // tk
    # TODO(synk): for very large n1 (dst fan-in) add a dst-axis tile so the A1
    # stream buffer decouples from n1 while keeping tk large (v6e/v7x note).
    vmem_limit = int(min(cap, resident + per_tk * tk + (16 << 20)))

    # Streamed operands are only padded (dtype preserved; no-op when already
    # aligned) -- the bf16 cast happens on the tile inside the kernel, so A1/X
    # are read from HBM exactly once.
    a1_p = _pad2d(a1, n1p, n0p)
    x_p = _pad2d(x, n0p, din_p)
    # Small resident operands: pad + cast is cheap.
    x_dst = _pad2d(x[:n1], n1p, din_p).astype(jnp.bfloat16)
    a2_p = _pad2d(a2, n2p, n1p).astype(jnp.bfloat16)
    a3_p = _pad2d(a3, n3p, n2p).astype(jnp.bfloat16)

    def pack(p, d_in_p, d_out_p):
        w_cat = jnp.concatenate([_pad2d(p["w_neigh"], d_in_p, d_out_p),
                                 _pad2d(p["w_self"], d_in_p, d_out_p)],
                                axis=0).astype(jnp.bfloat16)   # (2*d_in_p, d_out_p)
        b = jnp.pad(p["b"], (0, d_out_p - p["b"].shape[0]))
        return w_cat, b.reshape(1, d_out_p).astype(jnp.float32)

    w1, b1 = pack(params[0], din_p, dh_p)
    w2, b2 = pack(params[1], dh_p, dh_p)
    w3, b3 = pack(params[2], dh_p, dout_p)

    # Advisory cost so XLA schedules neighbours around this long fused call.
    flops = 2 * (n1 * n0 * in_size + 2 * n1 * in_size * hid_size
                 + n2 * n1 * hid_size + 2 * n2 * hid_size * hid_size
                 + n3 * n2 * hid_size + 2 * n3 * hid_size * out_size)
    bytes_accessed = int(a1.size * a1_bytes + x.size * x_bytes
                         + n1 * in_size * x_bytes
                         + (a2.size + a3.size) * 2
                         + (2 * in_size * hid_size + 2 * hid_size * hid_size
                            + 2 * hid_size * out_size) * 2
                         + n3 * out_size * 4)
    cost = pl.CostEstimate(flops=int(flops), transcendentals=0,
                           bytes_accessed=bytes_accessed)

    def full(shape):   # VMEM-resident operand (constant block index)
        return pl.BlockSpec(shape, lambda k: (0,) * len(shape))

    kernel = functools.partial(_fused_sage_kernel, n1=n1, n2=n2)

    out_p = pl.pallas_call(
        kernel,
        out_shape=jax.ShapeDtypeStruct((n3p, dout_p), jnp.float32),
        grid=(num_k,),
        in_specs=[
            pl.BlockSpec((n1p, tk), lambda k: (0, k)),    # A1: streamed over src
            pl.BlockSpec((tk, din_p), lambda k: (k, 0)),  # X : co-streamed tile
            full((n1p, din_p)),                           # X dst prefix (resident)
            full((n2p, n1p)),                             # A2
            full((n3p, n2p)),                             # A3
            full((2 * din_p, dh_p)), full((1, dh_p)),     # W1_cat, b1
            full((2 * dh_p, dh_p)), full((1, dh_p)),      # W2_cat, b2
            full((2 * dh_p, dout_p)), full((1, dout_p)),  # W3_cat, b3
        ],
        out_specs=full((n3p, dout_p)),
        scratch_shapes=[pltpu.VMEM((n1p, din_p), jnp.float32)],  # agg1 accumulator
        compiler_params=pltpu.CompilerParams(
            dimension_semantics=("arbitrary",),           # layer-1 src reduction
            vmem_limit_bytes=vmem_limit),
        cost_estimate=cost,
    )(a1_p, x_p, x_dst, a2_p, a3_p, w1, b1, w2, b2, w3, b3)

    return out_p[:n3, :out_size]


def sage_reference(blocks, x, params):
    """Pure-JAX f32 reference of the same forward pass (for validation)."""
    h = x.astype(jnp.float32)
    for l, (a, p) in enumerate(zip(blocks, params)):
        a = a.astype(jnp.float32)
        num_dst = a.shape[0]
        agg = a @ h
        h = agg @ p["w_neigh"] + h[:num_dst] @ p["w_self"] + p["b"]
        if l != len(params) - 1:
            h = jax.nn.relu(h)
    return h


def init_sage_params(key, in_size, hid_size, out_size):
    """CuGraphSAGEConv('mean') == Linear(2*in_f, out_f) on concat([agg, self])."""
    dims = [(in_size, hid_size), (hid_size, hid_size), (hid_size, out_size)]
    params = []
    for in_f, out_f in dims:
        key, kw, kb = jax.random.split(key, 3)
        bound = 1.0 / jnp.sqrt(2.0 * in_f)
        w_full = jax.random.uniform(kw, (out_f, 2 * in_f), jnp.float32,
                                    -bound, bound)
        b = jax.random.uniform(kb, (out_f,), jnp.float32, -bound, bound)
        # cugraph-ops agg_concat order: [agg_neigh, feat_self]; store the halves
        # transposed to (in_f, out_f) so the kernel computes H @ W on the MXU.
        params.append({"w_neigh": w_full[:, :in_f].T,
                       "w_self": w_full[:, in_f:].T,
                       "b": b})
    return params


def make_block(key, num_dst, num_src):
    """Dense row-normalized adjacency standing in for a DGL sampled block.
    Emitted in bf16 (what a production sampler should hand the kernel) so the
    wrapper never re-reads/re-writes A just to change dtype."""
    a = (jax.random.uniform(key, (num_dst, num_src)) < 0.3).astype(jnp.float32)
    deg = jnp.sum(a, axis=1, keepdims=True)
    return (a / jnp.maximum(deg, 1.0)).astype(jnp.bfloat16)   # mean aggregation


if __name__ == "__main__":
    in_size, hid_size, out_size = 32, 64, 16
    # 3-hop sampled node counts (src -> dst per block), dst is prefix of src.
    # Deliberately non-aligned so the padding/masking paths are exercised.
    node_counts = [70, 33, 17, 9]

    key = jax.random.PRNGKey(0)
    key, kx, kb0, kb1, kb2, kp = jax.random.split(key, 6)

    # Features emitted in bf16 upstream (kernel streams them without a cast pass).
    x = jax.random.normal(kx, (node_counts[0], in_size),
                          jnp.float32).astype(jnp.bfloat16)
    blocks = [
        make_block(kb0, node_counts[1], node_counts[0]),
        make_block(kb1, node_counts[2], node_counts[1]),
        make_block(kb2, node_counts[3], node_counts[2]),
    ]
    params = init_sage_params(kp, in_size, hid_size, out_size)

    out = jax.block_until_ready(jax.jit(sage_forward)(blocks, x, params))
    assert out.shape == (node_counts[-1], out_size), out.shape

    ref = sage_reference(blocks, x, params)
    err = float(jnp.max(jnp.abs(out - ref)))
    assert err < 5e-2, f"max abs error vs f32 reference too large: {err}"
    print("KERNEL_OK")
</pallas_src>

<mosaic_0001>
module attributes {stable_mosaic.version = 11 : i64} {
  func.func @_fused_sage_kernel(%arg0: i32, %arg1: memref<48x256xbf16, #tpu.memory_space<vmem>>, %arg2: memref<256x128xbf16, #tpu.memory_space<vmem>>, %arg3: memref<48x128xbf16, #tpu.memory_space<vmem>>, %arg4: memref<32x48xbf16, #tpu.memory_space<vmem>>, %arg5: memref<16x32xbf16, #tpu.memory_space<vmem>>, %arg6: memref<256x128xbf16, #tpu.memory_space<vmem>>, %arg7: memref<1x128xf32, #tpu.memory_space<vmem>>, %arg8: memref<256x128xbf16, #tpu.memory_space<vmem>>, %arg9: memref<1x128xf32, #tpu.memory_space<vmem>>, %arg10: memref<256x128xbf16, #tpu.memory_space<vmem>>, %arg11: memref<1x128xf32, #tpu.memory_space<vmem>>, %arg12: memref<16x128xf32, #tpu.memory_space<vmem>>, %arg13: memref<48x128xf32, #tpu.memory_space<vmem>>) attributes {dimension_semantics = [#tpu.dimension_semantics<arbitrary>], iteration_bounds = array<i64: 1>, scalar_prefetch = 0 : i64, scratch_operands = 1 : i64, tpu.core_type = #tpu.core_type<tc>, window_params = [{transform_indices = @transform_0, window_bounds = array<i64: 48, 256>}, {transform_indices = @transform_1, window_bounds = array<i64: 256, 128>}, {pipeline_mode = #tpu.pipeline_mode<synchronous>, transform_indices = @transform_2, window_bounds = array<i64: 48, 128>}, {pipeline_mode = #tpu.pipeline_mode<synchronous>, transform_indices = @transform_3, window_bounds = array<i64: 32, 48>}, {pipeline_mode = #tpu.pipeline_mode<synchronous>, transform_indices = @transform_4, window_bounds = array<i64: 16, 32>}, {pipeline_mode = #tpu.pipeline_mode<synchronous>, transform_indices = @transform_5, window_bounds = array<i64: 256, 128>}, {pipeline_mode = #tpu.pipeline_mode<synchronous>, transform_indices = @transform_6, window_bounds = array<i64: 1, 128>}, {pipeline_mode = #tpu.pipeline_mode<synchronous>, transform_indices = @transform_7, window_bounds = array<i64: 256, 128>}, {pipeline_mode = #tpu.pipeline_mode<synchronous>, transform_indices = @transform_8, window_bounds = array<i64: 1, 128>}, {pipeline_mode = #tpu.pipeline_mode<synchronous>, transform_indices = @transform_9, window_bounds = array<i64: 256, 128>}, {pipeline_mode = #tpu.pipeline_mode<synchronous>, transform_indices = @transform_10, window_bounds = array<i64: 1, 128>}, {pipeline_mode = #tpu.pipeline_mode<synchronous>, transform_indices = @transform_11, window_bounds = array<i64: 16, 128>}]} {
    %c0_i32 = arith.constant 0 : i32
    %0 = arith.cmpi eq, %arg0, %c0_i32 : i32
    %1 = arith.extui %0 : i1 to i32
    %c0_i32_0 = arith.constant 0 : i32
    %2 = arith.cmpi ne, %1, %c0_i32_0 : i32
    scf.if %2 {
      %cst_10 = arith.constant 0.000000e+00 : f32
      %12 = vector.broadcast %cst_10 : f32 to vector<48x128xf32>
      %c0_11 = arith.constant 0 : index
      %c0_12 = arith.constant 0 : index
      %13 = vector.load %arg13[%c0_11, %c0_12] : memref<48x128xf32, #tpu.memory_space<vmem>>, vector<48x128xf32>
      tpu.vector_store %arg13[%c0_11, %c0_12], %12 {strides = array<i32>} : memref<48x128xf32, #tpu.memory_space<vmem>>, vector<48x128xf32>,
    } else {
    }
    %c0 = arith.constant 0 : index
    %c0_1 = arith.constant 0 : index
    %3 = vector.load %arg1[%c0, %c0_1] : memref<48x256xbf16, #tpu.memory_space<vmem>>, vector<48x256xbf16>
    %c0_2 = arith.constant 0 : index
    %c0_3 = arith.constant 0 : index
    %4 = vector.load %arg2[%c0_2, %c0_3] : memref<256x128xbf16, #tpu.memory_space<vmem>>, vector<256x128xbf16>
    %c0_4 = arith.constant 0 : index
    %c0_5 = arith.constant 0 : index
    %5 = vector.load %arg13[%c0_4, %c0_5] : memref<48x128xf32, #tpu.memory_space<vmem>>, vector<48x128xf32>
    %cst = arith.constant dense<0.000000e+00> : vector<48x128xf32>
    %6 = tpu.matmul %3, %4, %cst {dimension_numbers = #tpu.dot_dimension_numbers<[1], [0], [0], [1], [0, 0, 1, 1], [], []>} : vector<48x256xbf16>, vector<256x128xbf16>, vector<48x128xf32> -> vector<48x128xf32>
    %7 = arith.addf %5, %6 : vector<48x128xf32>
    %c0_6 = arith.constant 0 : index
    %c0_7 = arith.constant 0 : index
    %8 = vector.load %arg13[%c0_6, %c0_7] : memref<48x128xf32, #tpu.memory_space<vmem>>, vector<48x128xf32>
    tpu.vector_store %arg13[%c0_6, %c0_7], %7 {strides = array<i32>} : memref<48x128xf32, #tpu.memory_space<vmem>>, vector<48x128xf32>,
    %c0_i32_8 = arith.constant 0 : i32
    %9 = arith.cmpi eq, %arg0, %c0_i32_8 : i32
    %10 = arith.extui %9 : i1 to i32
    %c0_i32_9 = arith.constant 0 : i32
    %11 = arith.cmpi ne, %10, %c0_i32_9 : i32
    scf.if %11 {
      %c0_10 = arith.constant 0 : index
      %c0_11 = arith.constant 0 : index
      %12 = vector.load %arg13[%c0_10, %c0_11] : memref<48x128xf32, #tpu.memory_space<vmem>>, vector<48x128xf32>
      %c0_12 = arith.constant 0 : index
      %c0_13 = arith.constant 0 : index
      %13 = vector.load %arg3[%c0_12, %c0_13] : memref<48x128xbf16, #tpu.memory_space<vmem>>, vector<48x128xbf16>
      %14 = arith.truncf %12 : vector<48x128xf32> to vector<48x128xbf16>
      %c0_14 = arith.constant 0 : index
      %c0_15 = arith.constant 0 : index
      %15 = vector.load %arg6[%c0_14, %c0_15] : memref<256x128xbf16, #tpu.memory_space<vmem>>, vector<128x128xbf16>
      %cst_16 = arith.constant dense<0.000000e+00> : vector<48x128xf32>
      %16 = tpu.matmul %14, %15, %cst_16 {dimension_numbers = #tpu.dot_dimension_numbers<[1], [0], [0], [1], [0, 0, 1, 1], [], []>} : vector<48x128xbf16>, vector<128x128xbf16>, vector<48x128xf32> -> vector<48x128xf32>
      %c128 = arith.constant 128 : index
      %c0_17 = arith.constant 0 : index
      %17 = vector.load %arg6[%c128, %c0_17] : memref<256x128xbf16, #tpu.memory_space<vmem>>, vector<128x128xbf16>
      %cst_18 = arith.constant dense<0.000000e+00> : vector<48x128xf32>
      %18 = tpu.matmul %13, %17, %cst_18 {dimension_numbers = #tpu.dot_dimension_numbers<[1], [0], [0], [1], [0, 0, 1, 1], [], []>} : vector<48x128xbf16>, vector<128x128xbf16>, vector<48x128xf32> -> vector<48x128xf32>
      %19 = arith.addf %16, %18 : vector<48x128xf32>
      %c0_19 = arith.constant 0 : index
      %c0_20 = arith.constant 0 : index
      %20 = vector.load %arg7[%c0_19, %c0_20] : memref<1x128xf32, #tpu.memory_space<vmem>>, vector<1x128xf32>
      %21 = vector.broadcast %20 : vector<1x128xf32> to vector<48x128xf32>
      %22 = arith.addf %19, %21 : vector<48x128xf32>
      %cst_21 = arith.constant 0.000000e+00 : f32
      %23 = vector.broadcast %cst_21 : f32 to vector<48x128xf32>
      %24 = arith.maximumf %22, %23 : vector<48x128xf32>
      %25 = tpu.iota {dimensions = array<i32: 0>} : vector<48x128xi32>
      %c33_i32 = arith.constant 33 : i32
      %26 = vector.broadcast %c33_i32 : i32 to vector<48x128xi32>
      %27 = arith.cmpi slt, %25, %26 : vector<48x128xi32>
      %cst_22 = arith.constant 0.000000e+00 : f32
      %28 = vector.broadcast %cst_22 : f32 to vector<48x128xf32>
      %29 = arith.select %27, %24, %28 : vector<48x128xi1>, vector<48x128xf32>
      %30 = arith.truncf %29 : vector<48x128xf32> to vector<48x128xbf16>
      %c0_23 = arith.constant 0 : index
      %c0_24 = arith.constant 0 : index
      %31 = vector.load %arg4[%c0_23, %c0_24] : memref<32x48xbf16, #tpu.memory_space<vmem>>, vector<32x48xbf16>
      %cst_25 = arith.constant dense<0.000000e+00> : vector<32x128xf32>
      %32 = tpu.matmul %31, %30, %cst_25 {dimension_numbers = #tpu.dot_dimension_numbers<[1], [0], [0], [1], [0, 0, 1, 1], [], []>} : vector<32x48xbf16>, vector<48x128xbf16>, vector<32x128xf32> -> vector<32x128xf32>
      %33 = vector.extract_strided_slice %30 {offsets = [0, 0], sizes = [32, 128], strides = [1, 1]} : vector<48x128xbf16> to vector<32x128xbf16>
      %34 = arith.truncf %32 : vector<32x128xf32> to vector<32x128xbf16>
      %c0_26 = arith.constant 0 : index
      %c0_27 = arith.constant 0 : index
      %35 = vector.load %arg8[%c0_26, %c0_27] : memref<256x128xbf16, #tpu.memory_space<vmem>>, vector<128x128xbf16>
      %cst_28 = arith.constant dense<0.000000e+00> : vector<32x128xf32>
      %36 = tpu.matmul %34, %35, %cst_28 {dimension_numbers = #tpu.dot_dimension_numbers<[1], [0], [0], [1], [0, 0, 1, 1], [], []>} : vector<32x128xbf16>, vector<128x128xbf16>, vector<32x128xf32> -> vector<32x128xf32>
      %c128_29 = arith.constant 128 : index
      %c0_30 = arith.constant 0 : index
      %37 = vector.load %arg8[%c128_29, %c0_30] : memref<256x128xbf16, #tpu.memory_space<vmem>>, vector<128x128xbf16>
      %cst_31 = arith.constant dense<0.000000e+00> : vector<32x128xf32>
      %38 = tpu.matmul %33, %37, %cst_31 {dimension_numbers = #tpu.dot_dimension_numbers<[1], [0], [0], [1], [0, 0, 1, 1], [], []>} : vector<32x128xbf16>, vector<128x128xbf16>, vector<32x128xf32> -> vector<32x128xf32>
      %39 = arith.addf %36, %38 : vector<32x128xf32>
      %c0_32 = arith.constant 0 : index
      %c0_33 = arith.constant 0 : index
      %40 = vector.load %arg9[%c0_32, %c0_33] : memref<1x128xf32, #tpu.memory_space<vmem>>, vector<1x128xf32>
      %41 = vector.broadcast %40 : vector<1x128xf32> to vector<32x128xf32>
      %42 = arith.addf %39, %41 : vector<32x128xf32>
      %cst_34 = arith.constant 0.000000e+00 : f32
      %43 = vector.broadcast %cst_34 : f32 to vector<32x128xf32>
      %44 = arith.maximumf %42, %43 : vector<32x128xf32>
      %45 = tpu.iota {dimensions = array<i32: 0>} : vector<32x128xi32>
      %c17_i32 = arith.constant 17 : i32
      %46 = vector.broadcast %c17_i32 : i32 to vector<32x128xi32>
      %47 = arith.cmpi slt, %45, %46 : vector<32x128xi32>
      %cst_35 = arith.constant 0.000000e+00 : f32
      %48 = vector.broadcast %cst_35 : f32 to vector<32x128xf32>
      %49 = arith.select %47, %44, %48 : vector<32x128xi1>, vector<32x128xf32>
      %50 = arith.truncf %49 : vector<32x128xf32> to vector<32x128xbf16>
      %c0_36 = arith.constant 0 : index
      %c0_37 = arith.constant 0 : index
      %51 = vector.load %arg5[%c0_36, %c0_37] : memref<16x32xbf16, #tpu.memory_space<vmem>>, vector<16x32xbf16>
      %cst_38 = arith.constant dense<0.000000e+00> : vector<16x128xf32>
      %52 = tpu.matmul %51, %50, %cst_38 {dimension_numbers = #tpu.dot_dimension_numbers<[1], [0], [0], [1], [0, 0, 1, 1], [], []>} : vector<16x32xbf16>, vector<32x128xbf16>, vector<16x128xf32> -> vector<16x128xf32>
      %53 = vector.extract_strided_slice %50 {offsets = [0, 0], sizes = [16, 128], strides = [1, 1]} : vector<32x128xbf16> to vector<16x128xbf16>
      %54 = arith.truncf %52 : vector<16x128xf32> to vector<16x128xbf16>
      %c0_39 = arith.constant 0 : index
      %c0_40 = arith.constant 0 : index
      %55 = vector.load %arg10[%c0_39, %c0_40] : memref<256x128xbf16, #tpu.memory_space<vmem>>, vector<128x128xbf16>
      %cst_41 = arith.constant dense<0.000000e+00> : vector<16x128xf32>
      %56 = tpu.matmul %54, %55, %cst_41 {dimension_numbers = #tpu.dot_dimension_numbers<[1], [0], [0], [1], [0, 0, 1, 1], [], []>} : vector<16x128xbf16>, vector<128x128xbf16>, vector<16x128xf32> -> vector<16x128xf32>
      %c128_42 = arith.constant 128 : index
      %c0_43 = arith.constant 0 : index
      %57 = vector.load %arg10[%c128_42, %c0_43] : memref<256x128xbf16, #tpu.memory_space<vmem>>, vector<128x128xbf16>
      %cst_44 = arith.constant dense<0.000000e+00> : vector<16x128xf32>
      %58 = tpu.matmul %53, %57, %cst_44 {dimension_numbers = #tpu.dot_dimension_numbers<[1], [0], [0], [1], [0, 0, 1, 1], [], []>} : vector<16x128xbf16>, vector<128x128xbf16>, vector<16x128xf32> -> vector<16x128xf32>
      %59 = arith.addf %56, %58 : vector<16x128xf32>
      %c0_45 = arith.constant 0 : index
      %c0_46 = arith.constant 0 : index
      %60 = vector.load %arg11[%c0_45, %c0_46] : memref<1x128xf32, #tpu.memory_space<vmem>>, vector<1x128xf32>
      %61 = vector.broadcast %60 : vector<1x128xf32> to vector<16x128xf32>
      %62 = arith.addf %59, %61 : vector<16x128xf32>
      %c0_47 = arith.constant 0 : index
      %c0_48 = arith.constant 0 : index
      %63 = vector.load %arg12[%c0_47, %c0_48] : memref<16x128xf32, #tpu.memory_space<vmem>>, vector<16x128xf32>
      tpu.vector_store %arg12[%c0_47, %c0_48], %62 {strides = array<i32>} : memref<16x128xf32, #tpu.memory_space<vmem>>, vector<16x128xf32>,
    } else {
    }
    return
  }
  func.func @transform_0(%arg0: i32) -> (i32, i32) {
    %c0_i32 = arith.constant 0 : i32
    %c0_i32_0 = arith.constant 0 : i32
    return %c0_i32, %arg0 : i32, i32
  }
  func.func @transform_1(%arg0: i32) -> (i32, i32) {
    %c0_i32 = arith.constant 0 : i32
    %c0_i32_0 = arith.constant 0 : i32
    return %arg0, %c0_i32 : i32, i32
  }
  func.func @transform_2(%arg0: i32) -> (i32, i32) {
    %c0_i32 = arith.constant 0 : i32
    %c0_i32_0 = arith.constant 0 : i32
    %c0_i32_1 = arith.constant 0 : i32
    return %c0_i32, %c0_i32_0 : i32, i32
  }
  func.func @transform_3(%arg0: i32) -> (i32, i32) {
    %c0_i32 = arith.constant 0 : i32
    %c0_i32_0 = arith.constant 0 : i32
    %c0_i32_1 = arith.constant 0 : i32
    return %c0_i32, %c0_i32_0 : i32, i32
  }
  func.func @transform_4(%arg0: i32) -> (i32, i32) {
    %c0_i32 = arith.constant 0 : i32
    %c0_i32_0 = arith.constant 0 : i32
    %c0_i32_1 = arith.constant 0 : i32
    return %c0_i32, %c0_i32_0 : i32, i32
  }
  func.func @transform_5(%arg0: i32) -> (i32, i32) {
    %c0_i32 = arith.constant 0 : i32
    %c0_i32_0 = arith.constant 0 : i32
    %c0_i32_1 = arith.constant 0 : i32
    return %c0_i32, %c0_i32_0 : i32, i32
  }
  func.func @transform_6(%arg0: i32) -> (i32, i32) {
    %c0_i32 = arith.constant 0 : i32
    %c0_i32_0 = arith.constant 0 : i32
    %c0_i32_1 = arith.constant 0 : i32
    return %c0_i32, %c0_i32_0 : i32, i32
  }
  func.func @transform_7(%arg0: i32) -> (i32, i32) {
    %c0_i32 = arith.constant 0 : i32
    %c0_i32_0 = arith.constant 0 : i32
    %c0_i32_1 = arith.constant 0 : i32
    return %c0_i32, %c0_i32_0 : i32, i32
  }
  func.func @transform_8(%arg0: i32) -> (i32, i32) {
    %c0_i32 = arith.constant 0 : i32
    %c0_i32_0 = arith.constant 0 : i32
    %c0_i32_1 = arith.constant 0 : i32
    return %c0_i32, %c0_i32_0 : i32, i32
  }
  func.func @transform_9(%arg0: i32) -> (i32, i32) {
    %c0_i32 = arith.constant 0 : i32
    %c0_i32_0 = arith.constant 0 : i32
    %c0_i32_1 = arith.constant 0 : i32
    return %c0_i32, %c0_i32_0 : i32, i32
  }
  func.func @transform_10(%arg0: i32) -> (i32, i32) {
    %c0_i32 = arith.constant 0 : i32
    %c0_i32_0 = arith.constant 0 : i32
    %c0_i32_1 = arith.constant 0 : i32
    return %c0_i32, %c0_i32_0 : i32, i32
  }
  func.func @transform_11(%arg0: i32) -> (i32, i32) {
    %c0_i32 = arith.constant 0 : i32
    %c0_i32_0 = arith.constant 0 : i32
    %c0_i32_1 = arith.constant 0 : i32
    return %c0_i32, %c0_i32_0 : i32, i32
  }
}

</mosaic_0001>

<bundles_post_ra>
// kernel: sage_forward.1
= control target key start
LH: loop header
LB: loop body
LE: loop exit
PB: predicated region body
PF: predicated region fallthrough
CT: control target
= control target key end

     0   :  { %v1674_v2 = vmov 0.0   ;;  %s2053_s0 = inlined_call_operand.vmem [shape: bf16[48,256], index: 0, kind: input, shape index: {}]   ;;  %s2054_s1 = inlined_call_operand.vmem [shape: bf16[256,128], index: 1, kind: input, shape index: {}]   ;;  %s2055_s2 = inlined_call_operand.vmem [shape: bf16[48,128], index: 2, kind: input, shape index: {}]   ;;  %s2056_s3 = inlined_call_operand.vmem [shape: bf16[32,48], index: 3, kind: input, shape index: {}]   ;;  %s2057_s4 = inlined_call_operand.vmem [shape: bf16[16,32], index: 4, kind: input, shape index: {}]   ;;  %s2058_s5 = inlined_call_operand.vmem [shape: bf16[256,128], index: 5, kind: input, shape index: {}]   ;;  %s2059_s6 = inlined_call_operand.vmem [shape: f32[1,128], index: 6, kind: input, shape index: {}]   ;;  %s2060_s7 = inlined_call_operand.vmem [shape: bf16[256,128], index: 7, kind: input, shape index: {}]   ;;  %s2061_s8 = inlined_call_operand.vmem [shape: f32[1,128], index: 8, kind: input, shape index: {}]   ;;  %s2062_s9 = inlined_call_operand.vmem [shape: bf16[256,128], index: 9, kind: input, shape index: {}]   ;;  %s2063_s10 = inlined_call_operand.vmem [shape: f32[1,128], index: 10, kind: input, shape index: {}]   ;;  %s2064_s11 = inlined_call_operand.hbm [shape: f32[16,128], index: 11, kind: output, shape index: {}]  }
   0x1   :  { %v1571_v0 = vld [vmem:[%s2054_s1 + $0x40] sm:$0xff]   ;;  %1411 = vmatprep.subr.bf16.mxu1 %v1674_v2  ;;  %v1573_v3 = vld [vmem:[%s2054_s1 + $0x48] sm:$0xff]   ;;  %v1575_v5 = vld [vmem:[%s2054_s1 + $0x50] sm:$0xff]  }
   0x2   :  { %v1572_v1 = vld [vmem:[%s2054_s1] sm:$0xff]   ;;  %1309 = vmatprep.subr.bf16.mxu0 %v1571_v0  ;;  %v1574_v4 = vld [vmem:[%s2054_s1 + $0x8] sm:$0xff]   ;;  %v1576_v6 = vld [vmem:[%s2054_s1 + $0x10] sm:$0xff]  }
   0x3   :  { %1310 = vmatpush3.bf16.msra.mxu0 %v1572_v1  ;;  %v1577_v7 = vld [vmem:[%s2054_s1 + $0x58] sm:$0xff]   ;;  %v1579_v9 = vld [vmem:[%s2054_s1 + $0x60] sm:$0xff]   ;;  %v1581_v11 = vld [vmem:[%s2054_s1 + $0x68] sm:$0xff]  }
   0x4   :  { %1311 = vmatprep.subr.bf16.mxu0 %v1573_v3  ;;  %v1578_v8 = vld [vmem:[%s2054_s1 + $0x18] sm:$0xff]   ;;  %v1580_v10 = vld [vmem:[%s2054_s1 + $0x20] sm:$0xff]   ;;  %v1582_v13 = vld [vmem:[%s2054_s1 + $0x28] sm:$0xff]  }
   0x5   :  { %v1589_v12 = vld [vmem:[%s2053_s0 + $0x4] ss:$8 sps:$4 sm:$0xff]   ;;  %v1583_v14 = vld [vmem:[%s2054_s1 + $0x70] sm:$0xff]   ;;  %v1585_v18 = vld [vmem:[%s2054_s1 + $0x78] sm:$0xff]  }
   0x6   :  { %252 = vmatprep.mubr.bf16.mxu0 %v1589_v12  ;;  %v1596_v15 = vld [vmem:[%s2058_s5 + $0x40] sm:$0xff]   ;;  %v1598_v16 = vld [vmem:[%s2058_s5 + $0x48] sm:$0xff]   ;;  %v1584_v17 = vld [vmem:[%s2054_s1 + $0x30] sm:$0xff]  }
   0x7   :  { %1312 = vmatpush3.bf16.msra.mxu0 %v1574_v4  ;;  %1412 = vmatpush3.bf16.msra.mxu1 %v1596_v15  ;;  %v1600_v19 = vld [vmem:[%s2058_s5 + $0x50] sm:$0xff]   ;;  %v1586_v20 = vld [vmem:[%s2054_s1 + $0x38] sm:$0xff]   ;;  %v1587_v21 = vld [vmem:[%s2053_s0] ss:$8 sps:$4 sm:$0xff]  }
   0x8   :  { %1313 = vmatprep.subr.bf16.mxu0 %v1575_v5  ;;  %1413 = vmatprep.subr.bf16.mxu1 %v1674_v2  ;;  %v1590_v22 = vld [vmem:[%s2053_s0 + $0x14] ss:$8 sps:$4 sm:$0xff]   ;;  %v1597_v24 = vld [vmem:[%s2058_s5] sm:$0xff]   ;;  %v1599_v26 = vld [vmem:[%s2058_s5 + $0x8] sm:$0xff]  }
   0x9   :  { %v1602_v23 = vld [vmem:[%s2058_s5 + $0x58] sm:$0xff]   ;;  %v1604_v25 = vld [vmem:[%s2058_s5 + $0x60] sm:$0xff]   ;;  %v1606_v28 = vld [vmem:[%s2058_s5 + $0x68] sm:$0xff]  }
   0xa   :  { %v1592_v27 = vld [vmem:[%s2053_s0 + $0x10] ss:$8 sps:$4 sm:$0xff]   ;;  %v1593_v29 = vld [vmem:[%s2053_s0 + $0x24] ss:$8 sps:$4 sm:$0xff]   ;;  %v1595_v33 = vld [vmem:[%s2053_s0 + $0x20] ss:$8 sps:$4 sm:$0xff]  }
   0xb   :  { %1314 = vmatpush3.bf16.msra.mxu0 %v1576_v6  ;;  %1414 = vmatpush3.bf16.msra.mxu1 %v1598_v16  ;;  %v1601_v30 = vld [vmem:[%s2058_s5 + $0x10] sm:$0xff]   ;;  %v1603_v32 = vld [vmem:[%s2058_s5 + $0x18] sm:$0xff]   ;;  %v1605_v34 = vld [vmem:[%s2058_s5 + $0x20] sm:$0xff]  }
   0xc   :  { %1315 = vmatprep.subr.bf16.mxu0 %v1577_v7  ;;  %1415 = vmatprep.subr.bf16.mxu1 %v1674_v2  ;;  %v1608_v31 = vld [vmem:[%s2058_s5 + $0x70] sm:$0xff]   ;;  %v1607_v35 = vld [vmem:[%s2058_s5 + $0x28] sm:$0xff]  }
   0xf   :  { %1316 = vmatpush3.bf16.msra.mxu0 %v1578_v8  ;;  %1416 = vmatpush3.bf16.msra.mxu1 %v1600_v19 }
  0x10   :  { %1317 = vmatprep.subr.bf16.mxu0 %v1579_v9  ;;  %1417 = vmatprep.subr.bf16.mxu1 %v1674_v2 }
  0x13   :  { %1318 = vmatpush3.bf16.msra.mxu0 %v1580_v10  ;;  %1418 = vmatpush3.bf16.msra.mxu1 %v1602_v23 }
  0x14   :  { %1319 = vmatprep.subr.bf16.mxu0 %v1581_v11  ;;  %1419 = vmatprep.subr.bf16.mxu1 %v1674_v2 }
  0x17   :  { %1320 = vmatpush3.bf16.msra.mxu0 %v1582_v13  ;;  %1420 = vmatpush3.bf16.msra.mxu1 %v1604_v25 }
  0x18   :  { %1321 = vmatprep.subr.bf16.mxu0 %v1583_v14  ;;  %1421 = vmatprep.subr.bf16.mxu1 %v1674_v2 }
  0x1b   :  { %1322 = vmatpush3.bf16.msra.mxu0 %v1584_v17  ;;  %1422 = vmatpush3.bf16.msra.mxu1 %v1606_v28 }
  0x1c   :  { %1323 = vmatprep.subr.bf16.mxu0 %v1585_v18  ;;  %1423 = vmatprep.subr.bf16.mxu1 %v1674_v2 }
  0x1f   :  { %1324 = vmatpush3.bf16.msra.mxu0 %v1586_v20  ;;  %1424 = vmatpush3.bf16.msra.mxu1 %v1608_v31 }
  0x20   :  { %1439 = vmatprep.subr.bf16.mxu0 %v1674_v2  ;;  %1425 = vmatprep.subr.bf16.mxu1 %v1674_v2 }
  0x22   :  { %253 = vmatmul.mubr.bf16.vlgmr.msra.gmra.mrb[0].mxu0 %v1587_v21 }
  0x23   :  { %260 = vmatprep.mubr.bf16.mxu0 %v1590_v22  ;;  %1440 = vmatpush3.bf16.msra.mxu0 %v1597_v24 }
  0x24   :  { %1441 = vmatprep.subr.bf16.mxu0 %v1674_v2 }
  0x27   :  { %1442 = vmatpush3.bf16.msra.mxu0 %v1599_v26 }
  0x28   :  { %1443 = vmatprep.subr.bf16.mxu0 %v1674_v2 }
  0x2a   :  { %261 = vmatmul.mubr.bf16.gmra.mrb[4].mxu0 %v1592_v27 }
  0x2b   :  { %268 = vmatprep.mubr.bf16.mxu0 %v1593_v29  ;;  %1444 = vmatpush3.bf16.msra.mxu0 %v1601_v30 }
  0x2c   :  { %1445 = vmatprep.subr.bf16.mxu0 %v1674_v2 }
  0x2f   :  { %1446 = vmatpush3.bf16.msra.mxu0 %v1603_v32 }
  0x30   :  { %1447 = vmatprep.subr.bf16.mxu0 %v1674_v2 }
  0x32   :  { %269 = vmatmul.mubr.bf16.gmra.mrb[8].mxu0 %v1595_v33 }
  0x33   :  { %1448 = vmatpush3.bf16.msra.mxu0 %v1605_v34 }
  0x34   :  { %1449 = vmatprep.subr.bf16.mxu0 %v1674_v2 }
  0x37   :  { %1450 = vmatpush3.bf16.msra.mxu0 %v1607_v35 }
  0x38   :  { %1451 = vmatprep.subr.bf16.mxu0 %v1674_v2 }
  0x39   :  { %16 = vsyncpa [#allocation4], 0  ;;  %v1609_v36 = vld [vmem:[%s2058_s5 + $0x30] sm:$0xff]   ;;  %v1610_v37 = vld [vmem:[%s2058_s5 + $0x78] sm:$0xff]   ;;  %vm1675_vm0 = vmmov 0   ;;  %v586_v12 = vlaneseq  ;;  %vm1676_vm2 = vmmov 1  }
  0x3a   :  { %1426 = vmatpush3.bf16.msra.mxu1 %v1610_v37  ;;  %v1611_v38 = vld [vmem:[%s2055_s2] sm:$0xff]   ;;  %v1612_v39 = vld [vmem:[%s2058_s5 + $0x38] sm:$0xff]   ;;  %1427 = vmatprep.mubr.msk.bf16.mxu1 %vm1675_vm0, %v1674_v2  ;;  %v1613_v40 = vld [vmem:[%s2055_s2 + $0x8] sm:$0xff]   ;;  %vm622_vm4 = vcmask 392192   ;;  %vm938_vm7 = vcmask 261120   ;;  %s1677_s5 = smov [#allocation3]  }
  0x3b   :  { %1452 = vmatpush3.bf16.msra.mxu0 %v1609_v36  ;;  %1455 = vmatprep.mubr.msk.bf16.mxu0 %vm1675_vm0, %v1674_v2  ;;  %v1614_v41 = vld [vmem:[%s2055_s2 + $0x10] sm:$0xff]   ;;  %v587_v13 = vshrl.u32 %v586_v12, 7  ;;  %v1615_v16 = vld [vmem:[%s2056_s3] sm:$0xff]   ;;  %v1626_v18 = vld [vmem:[%s2060_s7 + $0x8] sm:$0xff]  }
  0x3c   :  { %1453 = vmatprep.subr.bf16.mxu0 %v1674_v2  ;;  %v1625_v17 = vld [vmem:[%s2060_s7] sm:$0xff]   ;;  %v1627_v19 = vld [vmem:[%s2060_s7 + $0x10] sm:$0xff]   ;;  %v1628_v20 = vld [vmem:[%s2060_s7 + $0x18] sm:$0xff]  }
  0x3d   :  { %1428 = vmatmul.mubr.bf16.vlgmr.msra.gmra.mrb[0].mxu1 %v1611_v38  ;;  %v589_v14 = vadd.s32 16, %v587_v13  ;;  %v1629_v21 = vld [vmem:[%s2060_s7 + $0x20] sm:$0xff]   ;;  %v1630_v22 = vld [vmem:[%s2060_s7 + $0x28] sm:$0xff]   ;;  %v1631_v23 = vld [vmem:[%s2060_s7 + $0x30] sm:$0xff]  }
  0x3e   :  { %1431 = vmatprep.mubr.msk.bf16.mxu1 %vm1675_vm0, %v1674_v2  ;;  %v1262_v25 = vld [vmem:[%s2059_s6] ss:$0 sm:$0xff]  ;;  %v1636_v12 = vld [vmem:[%s2062_s9 + $0x58] sm:$0xff]   ;;  %v1644_v15 = vld [vmem:[%s2062_s9 + $0x10] sm:$0xff]  }
  0x3f   :  { %1454 = vmatpush3.bf16.msra.mxu0 %v1612_v39  ;;  %vm923_vm1 = vcmp.lt.s32.totalorder %v589_v14, 17 }
  0x40   :  { %vm1892_vm3 = vmpackc.low %vm1676_vm2, %vm923_vm1  ;;  %1497 = vmatprep.subr.bf16.mxu0 %v1625_v17 }
  0x45   :  { %1432 = vmatmul.mubr.bf16.gmra.mrb[4].mxu1 %v1613_v40 }
  0x46   :  { %1435 = vmatprep.mubr.msk.bf16.mxu1 %vm1675_vm0, %v1674_v2 }
  0x4d   :  { %1436 = vmatmul.mubr.bf16.gmra.mrb[8].mxu1 %v1614_v41 }
  0x4e   :  { %1473 = vmatprep.mubr.msk.bf16.mxu1 %vm622_vm4, %v1615_v16 }
  0xf5   :  { %v1325_v42 = vpop.f32.mrb[0].mxu0 }
  0xf6   :  { %v1326_v43 = vpop.f32.mrb[1].mxu0 }
  0xf7   :  { %v1327_v44 = vadd.f32 %v1326_v43, %v1325_v42  ;;  %v1328_v45 = vpop.f32.mrb[2].mxu0 }
  0xf8   :  { %v1329_v46 = vpop.f32.mrb[3].mxu0 }
  0xf9   :  { %v1330_v47 = vadd.f32 %v1329_v46, %v1328_v45  ;;  %v591_v46 = vadd.s32 32, %v587_v13  ;;  %v1637_v13 = vld [vmem:[%s2062_s9 + $0x60] sm:$0xff]  }
  0xfb   :  { %v304_v48 = vpack.c.bf16 %v1330_v47, %v1327_v44  ;;  %vm597_vm5 = vcmp.lt.s32.totalorder %v591_v46, 33 }
  0xfc   :  { %vm1265_vm6 = vmpackc.low %vm1676_vm2, %vm597_vm5 }
  0xfd   :  { %v1331_v49 = vpop.f32.mrb[4].mxu0  ;;  %1456 = vmatmul.mubr.bf16.vlgmr.msra.gmra.mrb[12].mxu0 %v304_v48 }
  0xfe   :  { %v1332_v50 = vpop.f32.mrb[5].mxu0  ;;  %1459 = vmatprep.mubr.msk.bf16.mxu0 %vm1675_vm0, %v1674_v2  ;;  %1498 = vmatpush3.bf16.msra.mxu0 %v1625_v17 }
  0xff   :  { %v1333_v51 = vadd.f32 %v1332_v50, %v1331_v49  ;;  %v1334_v52 = vpop.f32.mrb[6].mxu0  ;;  %1499 = vmatprep.subr.bf16.mxu0 %v1626_v18 }
 0x100   :  { %v1335_v53 = vpop.f32.mrb[7].mxu0 }
 0x101   :  { %v1336_v54 = vadd.f32 %v1335_v53, %v1334_v52 }
 0x102   :  { %1500 = vmatpush3.bf16.msra.mxu0 %v1626_v18 }
 0x103   :  { %v305_v55 = vpack.c.bf16 %v1336_v54, %v1333_v51  ;;  %1501 = vmatprep.subr.bf16.mxu0 %v1627_v19 }
 0x105   :  { %v1337_v56 = vpop.f32.mrb[8].mxu0  ;;  %1460 = vmatmul.mubr.bf16.gmra.mrb[16].mxu0 %v305_v55 }
 0x106   :  { %v1338_v57 = vpop.f32.mrb[9].mxu0  ;;  %1463 = vmatprep.mubr.msk.bf16.mxu0 %vm1675_vm0, %v1674_v2  ;;  %1502 = vmatpush3.bf16.msra.mxu0 %v1627_v19  ;;  %v1638_v19 = vld [vmem:[%s2062_s9 + $0x68] sm:$0xff]  }
 0x107   :  { %v1339_v58 = vadd.f32 %v1338_v57, %v1337_v56  ;;  %v1340_v59 = vpop.f32.mrb[10].mxu0  ;;  %1503 = vmatprep.subr.bf16.mxu0 %v1628_v20  ;;  %v1617_v56 = vld [vmem:[%s2060_s7 + $0x40] sm:$0xff]   ;;  %v1616_v57 = vld [vmem:[%s2056_s3 + $0x8] sm:$0xff]  }
 0x108   :  { %v1341_v60 = vpop.f32.mrb[11].mxu0 }
 0x109   :  { %v1342_v61 = vadd.f32 %v1341_v60, %v1340_v59  ;;  %v1619_v59 = vld [vmem:[%s2060_s7 + $0x50] sm:$0xff]   ;;  %v1620_v60 = vld [vmem:[%s2060_s7 + $0x58] sm:$0xff]  }
 0x10a   :  { %1504 = vmatpush3.bf16.msra.mxu0 %v1628_v20  ;;  %v1639_v20 = vld [vmem:[%s2062_s9 + $0x70] sm:$0xff]  }
 0x10b   :  { %v306_v62 = vpack.c.bf16 %v1342_v61, %v1339_v58  ;;  %1505 = vmatprep.subr.bf16.mxu0 %v1629_v21  ;;  %v1618_v58 = vld [vmem:[%s2060_s7 + $0x48] sm:$0xff]   ;;  %v1621_v61 = vld [vmem:[%s2060_s7 + $0x60] sm:$0xff]  }
 0x10d   :  { %1464 = vmatmul.mubr.bf16.gmra.mrb[20].mxu0 %v306_v62  ;;  %v1622_v62 = vld [vmem:[%s2060_s7 + $0x68] sm:$0xff]  }
 0x10e   :  { %1506 = vmatpush3.bf16.msra.mxu0 %v1629_v21  ;;  %v1640_v21 = vld [vmem:[%s2062_s9 + $0x78] sm:$0xff]  }
 0x10f   :  { %1507 = vmatprep.subr.bf16.mxu0 %v1630_v22 }
 0x110   :  { %v439_v63 = vpop.f32.mrb[0].mxu1 }
 0x111   :  { %v1429_v0 = vpop.f32.mrb[1].mxu1 }
 0x112   :  { %v442_v1 = vpop.f32.mrb[2].mxu1  ;;  %1508 = vmatpush3.bf16.msra.mxu0 %v1630_v22  ;;  %v1624_v0 = vld [vmem:[%s2060_s7 + $0x78] sm:$0xff]  }
 0x113   :  { %v1430_v3 = vpop.f32.mrb[3].mxu1  ;;  %1509 = vmatprep.subr.bf16.mxu0 %v1631_v23 }
 0x116   :  { %1510 = vmatpush3.bf16.msra.mxu0 %v1631_v23 }
 0x118   :  { %v447_v4 = vpop.f32.mrb[4].mxu1 }
 0x119   :  { %v1433_v5 = vpop.f32.mrb[5].mxu1 }
 0x11a   :  { %v450_v6 = vpop.f32.mrb[6].mxu1 }
 0x11b   :  { %v1434_v7 = vpop.f32.mrb[7].mxu1 }
 0x120   :  { %v455_v8 = vpop.f32.mrb[8].mxu1 }
 0x121   :  { %v1437_v9 = vpop.f32.mrb[9].mxu1 }
 0x122   :  { %v458_v10 = vpop.f32.mrb[10].mxu1  ;;  %v1633_v9 = vld [vmem:[%s2062_s9 + $0x40] sm:$0xff]  }
 0x123   :  { %v1438_v11 = vpop.f32.mrb[11].mxu1  ;;  %v1634_v10 = vld [vmem:[%s2062_s9 + $0x48] sm:$0xff]  }
 0x124   :  { %v1635_v11 = vld [vmem:[%s2062_s9 + $0x50] sm:$0xff]  }
 0x1d0   :  { %v544_v24 = vpop.f32.mrb[12].mxu0 }
 0x1d1   :  { %v545_v26 = vadd.f32 %v544_v24, %v439_v63  ;;  %v1457_v27 = vpop.f32.mrb[13].mxu0  ;;  %v1623_v63 = vld [vmem:[%s2060_s7 + $0x70] sm:$0xff]   ;;  %v1286_v24 = vld [vmem:[%s2061_s8] ss:$0 sm:$0xff] }
 0x1d2   :  { %v547_v28 = vpop.f32.mrb[14].mxu0 }
 0x1d3   :  { %v574_v29 = vadd.f32 %v1262_v25, %v545_v26  ;;  %v548_v30 = vadd.f32 %v547_v28, %v442_v1  ;;  %v1458_v31 = vpop.f32.mrb[15].mxu0  ;;  %v1632_v1 = vld [vmem:[%s2060_s7 + $0x38] sm:$0xff]  }
 0x1d4   :  { %1511 = vmatprep.subr.bf16.mxu0 %v1632_v1 }
 0x1d5   :  { %v575_v32 = vadd.f32 %v1262_v25, %v548_v30  ;;  %v580_v33 = vmax.f32 %v574_v29, 0.0  ;;  %1512 = vmatpush3.bf16.msra.mxu0 %v1632_v1 }
 0x1d6   :  { %1525 = vmatprep.subr.bf16.mxu0 %v1674_v2 }
 0x1d7   :  { %v581_v34 = vmax.f32 %v575_v32, 0.0 }
 0x1d8   :  { %v552_v35 = vpop.f32.mrb[16].mxu0 }
 0x1d9   :  { %v553_v36 = vadd.f32 %v552_v35, %v447_v4  ;;  %v1461_v37 = vpop.f32.mrb[17].mxu0  ;;  %v605_v38 = vpack.c.bf16 %v581_v34, %v580_v33 }
 0x1da   :  { %v555_v39 = vpop.f32.mrb[18].mxu0 }
 0x1db   :  { %v576_v40 = vadd.f32 %v1262_v25, %v553_v36  ;;  %v556_v41 = vadd.f32 %v555_v39, %v450_v6  ;;  %v1462_v42 = vpop.f32.mrb[19].mxu0  ;;  %1467 = vmatprep.subr.bf16.mxu1 %v605_v38  ;;  %v1642_v39 = vld [vmem:[%s2062_s9] sm:$0xff]  }
 0x1dc   :  { %1468 = vmatpush3.bf16.msra.mxu1 %v605_v38  ;;  %v1646_v42 = vld [vmem:[%s2062_s9 + $0x20] sm:$0xff]  }
 0x1dd   :  { %v577_v43 = vadd.f32 %v1262_v25, %v556_v41  ;;  %v582_v44 = vmax.f32 %v576_v40, 0.0  ;;  %v1643_v40 = vld [vmem:[%s2062_s9 + $0x8] sm:$0xff]   ;;  %v1645_v41 = vld [vmem:[%s2062_s9 + $0x18] sm:$0xff]  }
 0x1df   :  { %v583_v45 = vmax.f32 %v577_v43, 0.0  ;;  %v1647_v43 = vld [vmem:[%s2062_s9 + $0x28] sm:$0xff]  }
 0x1e0   :  { %v560_v47 = vpop.f32.mrb[20].mxu0 }
 0x1e1   :  { %v561_v48 = vadd.f32 %v560_v47, %v455_v8  ;;  %v1465_v49 = vpop.f32.mrb[21].mxu0  ;;  %v606_v50 = vpack.c.bf16 %v583_v45, %v582_v44  ;;  %v1648_v44 = vld [vmem:[%s2062_s9 + $0x30] sm:$0xff]   ;;  %v1649_v45 = vld [vmem:[%s2062_s9 + $0x38] sm:$0xff]   ;;  %s1210_s9 = sshll.u32 %s1677_s5, 4  ;;  %s1211_s9 = int_to_ptr.vmem [resolvable:$true] %s1210_s9 }
 0x1e2   :  { %v563_v51 = vpop.f32.mrb[22].mxu0  ;;  %s1650_s18 = scalar_lea.vmem %s1211_s9, 256  ;;  %p1655_p1 = scmp.lt.s32.totalorder %s1211_s9, %s1211_s9 }
 0x1e3   :  { %v578_v52 = vadd.f32 %v1262_v25, %v561_v48  ;;  %v1466_v53 = vpop.f32.mrb[23].mxu0  ;;  %1469 = vmatprep.subr.bf16.mxu1 %v606_v50  ;;  %p1651_p0 = scmp.ne.s32.totalorder %s1211_s9, %s1650_s18  ;;  %p1656_p2 = scmp.lt.s32.totalorder %s1650_s18, %s1650_s18 }
 0x1e4   :  { %1470 = vmatpush3.bf16.msra.mxu1 %v606_v50 }
 0x1e5   :  { %v584_v54 = vmax.f32 %v578_v52, 0.0  ;;  %p1657_p3 = por %p1656_p2, %p1655_p1 }
 0x1e7   :  { %v1266_v55 = vpack.c.bf16 %v1674_v2, %v584_v54  ;;  %p1658_p4 = pnand %p1657_p3, %p1651_p0 }
 0x1e9   :  { %1471 = vmatprep.subr.msk.bf16.mxu1 %vm1265_vm6, %v1266_v55 }
 0x1ea   :  { %1472 = vmatpush3.bf16.msk.msra.mxu1 %vm1265_vm6, %v1266_v55 }
 0x1eb   :  { %1477 = vmatprep.subr.bf16.mxu1 %v1617_v56 }
 0x1ed   :  { %1474 = vmatmul.mubr.msk.bf16.vlgmr.msra.gmra.mrb[12].mxu1 %vm622_vm4, %v1616_v57 }
 0x1ee   :  { %1478 = vmatpush3.bf16.msra.mxu1 %v1617_v56  ;;  %1493 = vmatprep.mubr.bf16.mxu1 %v605_v38  ;;  %v1641_v38 = vld [vmem:[%s2057_s4] sm:$0xff]  }
 0x1ef   :  { %1479 = vmatprep.subr.bf16.mxu1 %v1618_v58 }
 0x1f2   :  { %1480 = vmatpush3.bf16.msra.mxu1 %v1618_v58 }
 0x1f3   :  { %1481 = vmatprep.subr.bf16.mxu1 %v1619_v59 }
 0x1f6   :  { %1482 = vmatpush3.bf16.msra.mxu1 %v1619_v59 }
 0x1f7   :  { %1483 = vmatprep.subr.bf16.mxu1 %v1620_v60 }
 0x1fa   :  { %1484 = vmatpush3.bf16.msra.mxu1 %v1620_v60 }
 0x1fb   :  { %1485 = vmatprep.subr.bf16.mxu1 %v1621_v61 }
 0x1fe   :  { %1486 = vmatpush3.bf16.msra.mxu1 %v1621_v61 }
 0x1ff   :  { %1487 = vmatprep.subr.bf16.mxu1 %v1622_v62 }
 0x202   :  { %1488 = vmatpush3.bf16.msra.mxu1 %v1622_v62 }
 0x203   :  { %1489 = vmatprep.subr.bf16.mxu1 %v1623_v63 }
 0x206   :  { %1490 = vmatpush3.bf16.msra.mxu1 %v1623_v63 }
 0x207   :  { %1491 = vmatprep.subr.bf16.mxu1 %v1624_v0 }
 0x20a   :  { %1492 = vmatpush3.bf16.msra.mxu1 %v1624_v0 }
 0x20b   :  { %1517 = vmatprep.subr.bf16.mxu1 %v1674_v2 }
 0x20d   :  { %1494 = vmatmul.mubr.bf16.vlgmr.msra.gmra.mrb[16].mxu1 %v606_v50 }
 0x20e   :  { %1521 = vmatprep.mubr.msk.bf16.mxu1 %vm1675_vm0, %v1674_v2 }
 0x2c0   :  { %v1475_v3 = vpop.f32.mrb[12].mxu1 }
 0x2c1   :  { %v663_v4 = vpop.f32.mrb[13].mxu1 }
 0x2c2   :  { %v1476_v5 = vpop.f32.mrb[14].mxu1 }
 0x2c3   :  { %v679_v6 = vpack.c.bf16 %v1476_v5, %v1475_v3  ;;  %v666_v7 = vpop.f32.mrb[15].mxu1 }
 0x2c4   :  { %v678_v8 = vpack.c.bf16 %v666_v7, %v663_v4 }
 0x2c6   :  { %1513 = vmatprep.mubr.bf16.mxu0 %v678_v8 }
 0x2c7   :  { %1514 = vmatmul.mubr.bf16.vlgmr.msra.gmra.mrb[24].mxu0 %v679_v6 }
 0x2c8   :  { %1526 = vmatpush3.bf16.msra.mxu0 %v1633_v9  ;;  %1541 = vmatprep.mubr.msk.bf16.mxu0 %vm1675_vm0, %v1674_v2 }
 0x2c9   :  { %1527 = vmatprep.subr.bf16.mxu0 %v1674_v2 }
 0x2cc   :  { %1528 = vmatpush3.bf16.msra.mxu0 %v1634_v10 }
 0x2cd   :  { %1529 = vmatprep.subr.bf16.mxu0 %v1674_v2 }
 0x2d0   :  { %1530 = vmatpush3.bf16.msra.mxu0 %v1635_v11 }
 0x2d1   :  { %1531 = vmatprep.subr.bf16.mxu0 %v1674_v2 }
 0x2d4   :  { %1532 = vmatpush3.bf16.msra.mxu0 %v1636_v12 }
 0x2d5   :  { %1533 = vmatprep.subr.bf16.mxu0 %v1674_v2 }
 0x2d8   :  { %1534 = vmatpush3.bf16.msra.mxu0 %v1637_v13 }
 0x2d9   :  { %1535 = vmatprep.subr.bf16.mxu0 %v1674_v2 }
 0x2dc   :  { %1536 = vmatpush3.bf16.msra.mxu0 %v1638_v19 }
 0x2dd   :  { %1537 = vmatprep.subr.bf16.mxu0 %v1674_v2 }
 0x2e0   :  { %v1495_v14 = vpop.f32.mrb[16].mxu1  ;;  %1538 = vmatpush3.bf16.msra.mxu0 %v1639_v20 }
 0x2e1   :  { %v794_v16 = vpop.f32.mrb[17].mxu1  ;;  %1539 = vmatprep.subr.bf16.mxu0 %v1674_v2 }
 0x2e2   :  { %v1496_v17 = vpop.f32.mrb[18].mxu1 }
 0x2e3   :  { %v797_v18 = vpop.f32.mrb[19].mxu1 }
 0x2e4   :  { %1540 = vmatpush3.bf16.msra.mxu0 %v1640_v21 }
 0x39a   :  { %v1515_v22 = vpop.f32.mrb[24].mxu0 }
 0x39b   :  { %v900_v23 = vadd.f32 %v1515_v22, %v1495_v14  ;;  %v891_v25 = vpop.f32.mrb[25].mxu0 }
 0x39c   :  { %v892_v26 = vadd.f32 %v891_v25, %v794_v16  ;;  %v1516_v27 = vpop.f32.mrb[26].mxu0 }
 0x39d   :  { %v894_v28 = vpop.f32.mrb[27].mxu0  ;;  %v915_v31 = vadd.f32 %v1286_v24, %v900_v23 }
 0x39e   :  { %v913_v29 = vadd.f32 %v1286_v24, %v892_v26  ;;  %v895_v30 = vadd.f32 %v894_v28, %v797_v18 }
 0x39f   :  { %v919_v35 = vmax.f32 %v915_v31, 0.0 }
 0x3a0   :  { %v914_v32 = vadd.f32 %v1286_v24, %v895_v30  ;;  %v917_v33 = vmax.f32 %v913_v29, 0.0 }
 0x3a1   :  { %v1289_v37 = vpack.c.bf16 %v1674_v2, %v919_v35 }
 0x3a2   :  { %v918_v34 = vmax.f32 %v914_v32, 0.0 }
 0x3a4   :  { %v929_v36 = vpack.c.bf16 %v918_v34, %v917_v33 }
 0x3a6   :  { %1518 = vmatpush3.bf16.msra.mxu1 %v929_v36  ;;  %1542 = vmatmul.mubr.bf16.vlgmr.msra.gmra.mrb[28].mxu0 %v929_v36 }
 0x3a7   :  { %1519 = vmatprep.subr.bf16.mxu1 %v1674_v2 }
 0x3aa   :  { %1520 = vmatpush3.bf16.msk.msra.mxu1 %vm1892_vm3, %v1289_v37 }
 0x3ab   :  { %1545 = vmatprep.subr.bf16.mxu1 %v1674_v2 }
 0x3ad   :  { %1522 = vmatmul.mubr.msk.bf16.vlgmr.msra.gmra.mrb[20].mxu1 %vm938_vm7, %v1641_v38 }
 0x3ae   :  { %1546 = vmatpush3.bf16.msra.mxu1 %v1642_v39  ;;  %1561 = vmatprep.mubr.msk.bf16.mxu1 %vm1675_vm0, %v1674_v2 }
 0x3af   :  { %1547 = vmatprep.subr.bf16.mxu1 %v1674_v2 }
 0x3b2   :  { %1548 = vmatpush3.bf16.msra.mxu1 %v1643_v40 }
 0x3b3   :  { %1549 = vmatprep.subr.bf16.mxu1 %v1674_v2 }
 0x3b6   :  { %1550 = vmatpush3.bf16.msra.mxu1 %v1644_v15 }
 0x3b7   :  { %1551 = vmatprep.subr.bf16.mxu1 %v1674_v2 }
 0x3ba   :  { %1552 = vmatpush3.bf16.msra.mxu1 %v1645_v41 }
 0x3bb   :  { %1553 = vmatprep.subr.bf16.mxu1 %v1674_v2 }
 0x3be   :  { %1554 = vmatpush3.bf16.msra.mxu1 %v1646_v42 }
 0x3bf   :  { %1555 = vmatprep.subr.bf16.mxu1 %v1674_v2 }
 0x3c2   :  { %1556 = vmatpush3.bf16.msra.mxu1 %v1647_v43 }
 0x3c3   :  { %1557 = vmatprep.subr.bf16.mxu1 %v1674_v2 }
 0x3c6   :  { %1558 = vmatpush3.bf16.msra.mxu1 %v1648_v44 }
 0x3c7   :  { %1559 = vmatprep.subr.bf16.mxu1 %v1674_v2  ;;  %v1308_v2 = vld [vmem:[%s2063_s10] ss:$0 sm:$0xff] }
 0x3ca   :  { %1560 = vmatpush3.bf16.msra.mxu1 %v1649_v45 }
 0x479   :  { %v1098_v46 = vpop.f32.mrb[28].mxu0 }
 0x47a   :  { %v1543_v47 = vpop.f32.mrb[29].mxu0 }
 0x47b   :  { %v1101_v48 = vpop.f32.mrb[30].mxu0 }
 0x47c   :  { %v1544_v49 = vpop.f32.mrb[31].mxu0 }
 0x480   :  { %v976_v50 = vpop.f32.mrb[20].mxu1 }
 0x481   :  { %v1523_v51 = vpop.f32.mrb[21].mxu1 }
 0x482   :  { %v979_v52 = vpop.f32.mrb[22].mxu1 }
 0x483   :  { %v983_v53 = vpack.c.bf16 %v979_v52, %v976_v50  ;;  %v1524_v54 = vpop.f32.mrb[23].mxu1 }
 0x485   :  { %1562 = vmatmul.mubr.bf16.vlgmr.msra.gmra.mrb[24].mxu1 %v983_v53 }
 0x558   :  { %v1187_v55 = vpop.f32.mrb[24].mxu1 }
 0x559   :  { %v1188_v56 = vadd.f32 %v1187_v55, %v1098_v46  ;;  %v1563_v57 = vpop.f32.mrb[25].mxu1 }
 0x55a   :  { %v1190_v58 = vpop.f32.mrb[26].mxu1 }
 0x55b   :  { %v1201_v59 = vadd.f32 %v1308_v2, %v1188_v56  ;;  %v1191_v60 = vadd.f32 %v1190_v58, %v1101_v48  ;;  %v1564_v61 = vpop.f32.mrb[27].mxu1 }
 0x55d   :  { %1203 = vst [vmem:[#allocation3] sm:$0xff] %v1201_v59  ;;  %v1202_v62 = vadd.f32 %v1308_v2, %v1191_v60 }
 0x55f   :  { %1204 = vst [vmem:[#allocation3 + $0x8] sm:$0xff] %v1202_v62 }
 0x560   :  { %1661 = shalt.err (!%p1658_p4)
}
 0x561   :  { %s1662_s19 = scalar_lea.hbm %s2064_s11, 256 }
 0x562   :  { %p1663_p5 = scmp.ne.s32.totalorder %s2064_s11, %s1662_s19  ;;  %p1666_p6 = scmp.lt.u32.totalorder %s1662_s19, %s2064_s11 }
 0x564   :  { %p1668_p7 = pnand %p1666_p6, %p1663_p5 }
 0x566   :  { %1671 = shalt.err (!%p1668_p7)
}
 0x567   :  { %s1678_s23 = smov 128   ;;  %s1679_s8 = smov 8  }
 0x568   :  { %1216 = dma.vmem_to_hbm [thread:$0]  %s1211_s9, 256, %s2064_s11, [#allocation4], %s1678_s23, %s1678_s23, %s1679_s8  }
 0x569   :  { %1672 = dma.done.wait [#allocation4], 256  }
 0x56a   :  { %1673 = vsyncadd [#allocation4], 4294967040 }
 0x56b   :  { %1220 = vsyncpa [#allocation4], 1 }

</bundles_post_ra>
